<compile_context>
chip_gen: v6e
topology: v6e:2x2x1
jax: 0.10.0
libtpu: 0.0.40
codegen_flags: <defaults>
</compile_context>

<pallas_src>
import jax
import jax.numpy as jnp
from jax import lax
from jax.experimental import pallas as pl
from jax.experimental.pallas import tpu as pltpu


HIDDEN = 20          # hidden_neurons default in SIRDNet
NUM_LAYERS = 4       # num_layers default in SIRDNet
IN_DIM = 1
OUT_DIM = 4
TANH_GAIN = 5.0 / 3.0  # nn.init.calculate_gain('tanh')

LANE = 128
CHUNK = 512                   # in-kernel lane-chunk width (12 vregs per f32 activation)
MAX_TILE_SINGLE_CORE = 8192   # v5e/v6e: one serial TC -> biggest block, fewest grid steps
MAX_TILE_MEGACORE = 4096      # v7x: smaller per-step block, >=2 parallel grid steps


def _round_up(x, m):
    return ((x + m - 1) // m) * m


def _xavier_uniform(key, fan_out, fan_in, gain):
    # Matches torch.nn.init.xavier_uniform_ (bound = gain*sqrt(6/(fan_in+fan_out))),
    # stored PyTorch-native as (out_features, in_features).
    bound = gain * jnp.sqrt(6.0 / (fan_in + fan_out))
    return jax.random.uniform(key, (fan_out, fan_in), jnp.float32, -bound, bound)


def init_params(seed=42):
    """Deterministic synthetic parameters (shapes identical to SIRDNet.__init__)."""
    key = jax.random.PRNGKey(seed)
    dims = [IN_DIM] + [HIDDEN] * NUM_LAYERS + [OUT_DIM]
    params = []
    for i in range(len(dims) - 1):
        key, sub = jax.random.split(key)
        w = _xavier_uniform(sub, dims[i + 1], dims[i], TANH_GAIN)  # (out, in)
        b = jnp.zeros((dims[i + 1], 1), jnp.float32)               # bias.data.fill_(0)
        params.append((w, b))
    return params


def _is_megacore():
    """True on chips exposing 2 TensorCores to one Pallas call (v7x / v5p / v4)."""
    try:
        kind = jax.devices()[0].device_kind.lower()
    except Exception:
        return False
    return any(tag in kind for tag in ("v7", "v5p", "v4"))


def _choose_tile(n):
    """Pick the per-grid-step batch-tile width (columns, multiple of 128)."""
    n_lane = _round_up(max(n, 1), LANE)
    megacore = _is_megacore()
    max_tile = MAX_TILE_MEGACORE if megacore else MAX_TILE_SINGLE_CORE
    # On megacore parts, make the grid >= 2 once the batch is big enough to
    # split, so "parallel" semantics actually uses both TensorCores.
    min_steps = 2 if (megacore and n_lane >= 2 * CHUNK) else 1
    steps = max(min_steps, -(-n_lane // max_tile))
    tile = -(-n_lane // steps)
    # Keep tile divisible by the in-kernel chunk so the fori_loop is exact.
    tile = _round_up(tile, CHUNK) if tile > CHUNK else _round_up(tile, LANE)
    return tile


def _make_kernel(tile_n, chunk):
    """Build the fused-MLP kernel for a (features, tile_n) batch tile.

    refs = (w0, b0, w1, b1, ..., w4, b4, out_ref); weights are (out, in),
    biases (out, 1).  The kernel walks the tile in `chunk`-column lane slices
    via lax.fori_loop so activation live ranges reset per chunk (no vreg
    spilling even for wide tiles).  Hidden layers use tanh; the final Linear
    has no activation, matching nn.Sequential([Linear, Tanh]*4 + [Linear]).
    """
    n_chunks = tile_n // chunk

    def kernel(x_ref, *refs):
        out_ref = refs[-1]
        param_refs = refs[:-1]
        n_layers = len(param_refs) // 2

        def chunk_body(c, carry):
            start = pl.multiple_of(c * chunk, LANE)
            x = x_ref[:, pl.ds(start, chunk)].astype(jnp.float32)   # (1, chunk)

            # Layer 0 has in_dim == 1: a K=1 matmul wastes an MXU push/pop at
            # the head of the serial dependency chain, so do it on the VPU as
            # a broadcast multiply-add (sublane broadcast of x, lane broadcast
            # of w0/b0).
            w0 = param_refs[0][...]                                 # (HIDDEN, 1)
            b0 = param_refs[1][...]                                 # (HIDDEN, 1)
            h = jnp.tanh(w0 * x + b0)                               # (HIDDEN, chunk)

            for li in range(1, n_layers):
                w = param_refs[2 * li][...]                         # (out, in)
                b = param_refs[2 * li + 1][...]                     # (out, 1)
                h = jnp.dot(w, h, preferred_element_type=jnp.float32) + b
                if li < n_layers - 1:
                    h = jnp.tanh(h)

            # Lane-dense unmasked store into the output tile.
            out_ref[:, pl.ds(start, chunk)] = h.astype(out_ref.dtype)
            return carry

        if n_chunks == 1:
            chunk_body(0, 0)
        else:
            lax.fori_loop(0, n_chunks, chunk_body, 0, unroll=False)

    return kernel


def sirdnet_forward(t, params, *, tile_n=None):
    """t: (N, 1) float32 -> (N, 4) float32."""
    n = t.shape[0]

    if tile_n is None:
        tile_n = _choose_tile(n)
    else:
        tile_n = _round_up(tile_n, LANE)
        if tile_n > CHUNK:
            tile_n = _round_up(tile_n, CHUNK)
    chunk = min(CHUNK, tile_n)
    n_pad = _round_up(max(n, 1), tile_n)

    # (N, 1) row-major -> lane-dense (1, n_pad); pad columns compute harmless
    # garbage (tanh of biases) and are sliced off below.
    x = jnp.zeros((1, n_pad), jnp.float32).at[0, :n].set(t[:, 0].astype(jnp.float32))

    flat = []
    in_specs = [pl.BlockSpec((1, tile_n), lambda i: (0, i))]  # batch-tiled input
    for w, b in params:
        flat.extend([w, b])
        # Whole-array blocks with a constant block index: fetched into VMEM
        # once and reused across grid steps (no per-step re-DMA).
        in_specs.append(pl.BlockSpec(w.shape, lambda i: (0, 0)))
        in_specs.append(pl.BlockSpec(b.shape, lambda i: (0, 0)))

    out_spec = pl.BlockSpec((OUT_DIM, tile_n), lambda i: (0, i))

    out_t = pl.pallas_call(
        _make_kernel(tile_n, chunk),
        out_shape=jax.ShapeDtypeStruct((OUT_DIM, n_pad), jnp.float32),
        grid_spec=pltpu.PrefetchScalarGridSpec(
            num_scalar_prefetch=0,
            grid=(n_pad // tile_n,),
            in_specs=in_specs,
            out_specs=out_spec,
        ),
        compiler_params=pltpu.CompilerParams(
            dimension_semantics=("parallel",),
        ),
    )(x, *flat)

    # (OUT_DIM, n_pad) -> (N, OUT_DIM); cheap XLA slice+transpose outside the
    # kernel (kept outside to preserve lane-dense vst stores in the kernel).
    return out_t[:, :n].T


def sirdnet_reference(t, params):
    """Plain-JAX reference for correctness checking (PyTorch layout: x @ W.T + b)."""
    x = t.astype(jnp.float32)
    n_layers = len(params)
    for li, (w, b) in enumerate(params):
        x = x @ w.T + b.T
        if li < n_layers - 1:
            x = jnp.tanh(x)
    return x


# Inverse-mode epidemiological parameters (module properties, not part of forward).
def beta(raw):
    return jax.nn.sigmoid(raw) * 0.9 + 0.1


def gamma(raw):
    return jax.nn.sigmoid(raw) * 0.09 + 0.01


def mu(raw):
    return jax.nn.sigmoid(raw) * 0.09 + 0.01


if __name__ == "__main__":
    params = init_params(seed=42)
    key = jax.random.PRNGKey(0)
    k1, k2 = jax.random.split(key)

    # Small batch: single grid step, single in-kernel chunk.
    N_SMALL = 64
    t_small = jax.random.uniform(k1, (N_SMALL, 1), jnp.float32)
    out_small = jax.block_until_ready(sirdnet_forward(t_small, params))
    ref_small = sirdnet_reference(t_small, params)
    assert out_small.shape == (N_SMALL, OUT_DIM)
    assert jnp.allclose(out_small, ref_small, atol=1e-4, rtol=1e-4), \
        "Pallas output mismatch vs reference (small batch)"

    # Mid batch: exercises lane padding, the in-kernel chunk loop and (on
    # megacore parts) a >=2-step parallel grid.
    N_MID = 1300
    t_mid = jax.random.uniform(k2, (N_MID, 1), jnp.float32)
    out_mid = jax.block_until_ready(sirdnet_forward(t_mid, params))
    ref_mid = sirdnet_reference(t_mid, params)
    assert out_mid.shape == (N_MID, OUT_DIM)
    assert jnp.allclose(out_mid, ref_mid, atol=1e-4, rtol=1e-4), \
        "Pallas output mismatch vs reference (mid batch)"

    print("KERNEL_OK")
</pallas_src>

<mosaic_0001>
module attributes {stable_mosaic.version = 11 : i64} {
  func.func @kernel(%arg0: i32, %arg1: memref<1x128xf32, #tpu.memory_space<vmem>>, %arg2: memref<20x1xf32, #tpu.memory_space<vmem>>, %arg3: memref<20x1xf32, #tpu.memory_space<vmem>>, %arg4: memref<20x20xf32, #tpu.memory_space<vmem>>, %arg5: memref<20x1xf32, #tpu.memory_space<vmem>>, %arg6: memref<20x20xf32, #tpu.memory_space<vmem>>, %arg7: memref<20x1xf32, #tpu.memory_space<vmem>>, %arg8: memref<20x20xf32, #tpu.memory_space<vmem>>, %arg9: memref<20x1xf32, #tpu.memory_space<vmem>>, %arg10: memref<4x20xf32, #tpu.memory_space<vmem>>, %arg11: memref<4x1xf32, #tpu.memory_space<vmem>>, %arg12: memref<4x128xf32, #tpu.memory_space<vmem>>) attributes {dimension_semantics = [#tpu.dimension_semantics<parallel>], iteration_bounds = array<i64: 1>, scalar_prefetch = 0 : i64, scratch_operands = 0 : i64, tpu.core_type = #tpu.core_type<tc>, window_params = [{transform_indices = @transform_0, window_bounds = array<i64: 1, 128>}, {pipeline_mode = #tpu.pipeline_mode<synchronous>, transform_indices = @transform_1, window_bounds = array<i64: 20, 1>}, {pipeline_mode = #tpu.pipeline_mode<synchronous>, transform_indices = @transform_2, window_bounds = array<i64: 20, 1>}, {pipeline_mode = #tpu.pipeline_mode<synchronous>, transform_indices = @transform_3, window_bounds = array<i64: 20, 20>}, {pipeline_mode = #tpu.pipeline_mode<synchronous>, transform_indices = @transform_4, window_bounds = array<i64: 20, 1>}, {pipeline_mode = #tpu.pipeline_mode<synchronous>, transform_indices = @transform_5, window_bounds = array<i64: 20, 20>}, {pipeline_mode = #tpu.pipeline_mode<synchronous>, transform_indices = @transform_6, window_bounds = array<i64: 20, 1>}, {pipeline_mode = #tpu.pipeline_mode<synchronous>, transform_indices = @transform_7, window_bounds = array<i64: 20, 20>}, {pipeline_mode = #tpu.pipeline_mode<synchronous>, transform_indices = @transform_8, window_bounds = array<i64: 20, 1>}, {pipeline_mode = #tpu.pipeline_mode<synchronous>, transform_indices = @transform_9, window_bounds = array<i64: 4, 20>}, {pipeline_mode = #tpu.pipeline_mode<synchronous>, transform_indices = @transform_10, window_bounds = array<i64: 4, 1>}, {transform_indices = @transform_11, window_bounds = array<i64: 4, 128>}]} {
    %c0_i32 = arith.constant 0 : i32
    %0 = tpu.assume_multiple %c0_i32, 128 : i32
    %c0 = arith.constant 0 : index
    %1 = arith.index_cast %0 : i32 to index
    %2 = vector.load %arg1[%c0, %1] : memref<1x128xf32, #tpu.memory_space<vmem>>, vector<1x128xf32>
    %c0_0 = arith.constant 0 : index
    %c0_1 = arith.constant 0 : index
    %3 = vector.load %arg2[%c0_0, %c0_1] : memref<20x1xf32, #tpu.memory_space<vmem>>, vector<20x1xf32>
    %c0_2 = arith.constant 0 : index
    %c0_3 = arith.constant 0 : index
    %4 = vector.load %arg3[%c0_2, %c0_3] : memref<20x1xf32, #tpu.memory_space<vmem>>, vector<20x1xf32>
    %5 = vector.broadcast %3 : vector<20x1xf32> to vector<20x128xf32>
    %6 = vector.broadcast %2 : vector<1x128xf32> to vector<20x128xf32>
    %7 = arith.mulf %5, %6 : vector<20x128xf32>
    %8 = vector.broadcast %4 : vector<20x1xf32> to vector<20x128xf32>
    %9 = arith.addf %7, %8 : vector<20x128xf32>
    %10 = math.tanh %9 : vector<20x128xf32>
    %c0_4 = arith.constant 0 : index
    %c0_5 = arith.constant 0 : index
    %11 = vector.load %arg4[%c0_4, %c0_5] : memref<20x20xf32, #tpu.memory_space<vmem>>, vector<20x20xf32>
    %c0_6 = arith.constant 0 : index
    %c0_7 = arith.constant 0 : index
    %12 = vector.load %arg5[%c0_6, %c0_7] : memref<20x1xf32, #tpu.memory_space<vmem>>, vector<20x1xf32>
    %cst = arith.constant dense<0.000000e+00> : vector<20x128xf32>
    %13 = tpu.matmul %11, %10, %cst {dimension_numbers = #tpu.dot_dimension_numbers<[1], [0], [0], [1], [0, 0, 1, 1], [], []>} : vector<20x20xf32>, vector<20x128xf32>, vector<20x128xf32> -> vector<20x128xf32>
    %14 = vector.broadcast %12 : vector<20x1xf32> to vector<20x128xf32>
    %15 = arith.addf %13, %14 : vector<20x128xf32>
    %16 = math.tanh %15 : vector<20x128xf32>
    %c0_8 = arith.constant 0 : index
    %c0_9 = arith.constant 0 : index
    %17 = vector.load %arg6[%c0_8, %c0_9] : memref<20x20xf32, #tpu.memory_space<vmem>>, vector<20x20xf32>
    %c0_10 = arith.constant 0 : index
    %c0_11 = arith.constant 0 : index
    %18 = vector.load %arg7[%c0_10, %c0_11] : memref<20x1xf32, #tpu.memory_space<vmem>>, vector<20x1xf32>
    %cst_12 = arith.constant dense<0.000000e+00> : vector<20x128xf32>
    %19 = tpu.matmul %17, %16, %cst_12 {dimension_numbers = #tpu.dot_dimension_numbers<[1], [0], [0], [1], [0, 0, 1, 1], [], []>} : vector<20x20xf32>, vector<20x128xf32>, vector<20x128xf32> -> vector<20x128xf32>
    %20 = vector.broadcast %18 : vector<20x1xf32> to vector<20x128xf32>
    %21 = arith.addf %19, %20 : vector<20x128xf32>
    %22 = math.tanh %21 : vector<20x128xf32>
    %c0_13 = arith.constant 0 : index
    %c0_14 = arith.constant 0 : index
    %23 = vector.load %arg8[%c0_13, %c0_14] : memref<20x20xf32, #tpu.memory_space<vmem>>, vector<20x20xf32>
    %c0_15 = arith.constant 0 : index
    %c0_16 = arith.constant 0 : index
    %24 = vector.load %arg9[%c0_15, %c0_16] : memref<20x1xf32, #tpu.memory_space<vmem>>, vector<20x1xf32>
    %cst_17 = arith.constant dense<0.000000e+00> : vector<20x128xf32>
    %25 = tpu.matmul %23, %22, %cst_17 {dimension_numbers = #tpu.dot_dimension_numbers<[1], [0], [0], [1], [0, 0, 1, 1], [], []>} : vector<20x20xf32>, vector<20x128xf32>, vector<20x128xf32> -> vector<20x128xf32>
    %26 = vector.broadcast %24 : vector<20x1xf32> to vector<20x128xf32>
    %27 = arith.addf %25, %26 : vector<20x128xf32>
    %28 = math.tanh %27 : vector<20x128xf32>
    %c0_18 = arith.constant 0 : index
    %c0_19 = arith.constant 0 : index
    %29 = vector.load %arg10[%c0_18, %c0_19] : memref<4x20xf32, #tpu.memory_space<vmem>>, vector<4x20xf32>
    %c0_20 = arith.constant 0 : index
    %c0_21 = arith.constant 0 : index
    %30 = vector.load %arg11[%c0_20, %c0_21] : memref<4x1xf32, #tpu.memory_space<vmem>>, vector<4x1xf32>
    %cst_22 = arith.constant dense<0.000000e+00> : vector<4x128xf32>
    %31 = tpu.matmul %29, %28, %cst_22 {dimension_numbers = #tpu.dot_dimension_numbers<[1], [0], [0], [1], [0, 0, 1, 1], [], []>} : vector<4x20xf32>, vector<20x128xf32>, vector<4x128xf32> -> vector<4x128xf32>
    %32 = vector.broadcast %30 : vector<4x1xf32> to vector<4x128xf32>
    %33 = arith.addf %31, %32 : vector<4x128xf32>
    %c0_23 = arith.constant 0 : index
    %34 = arith.index_cast %0 : i32 to index
    %35 = vector.load %arg12[%c0_23, %34] : memref<4x128xf32, #tpu.memory_space<vmem>>, vector<4x128xf32>
    tpu.vector_store %arg12[%c0_23, %34], %33 {strides = array<i32>} : memref<4x128xf32, #tpu.memory_space<vmem>>, vector<4x128xf32>,
    return
  }
  func.func @transform_0(%arg0: i32) -> (i32, i32) {
    %c0_i32 = arith.constant 0 : i32
    %c0_i32_0 = arith.constant 0 : i32
    return %c0_i32, %arg0 : i32, i32
  }
  func.func @transform_1(%arg0: i32) -> (i32, i32) {
    %c0_i32 = arith.constant 0 : i32
    %c0_i32_0 = arith.constant 0 : i32
    %c0_i32_1 = arith.constant 0 : i32
    return %c0_i32, %c0_i32_0 : i32, i32
  }
  func.func @transform_2(%arg0: i32) -> (i32, i32) {
    %c0_i32 = arith.constant 0 : i32
    %c0_i32_0 = arith.constant 0 : i32
    %c0_i32_1 = arith.constant 0 : i32
    return %c0_i32, %c0_i32_0 : i32, i32
  }
  func.func @transform_3(%arg0: i32) -> (i32, i32) {
    %c0_i32 = arith.constant 0 : i32
    %c0_i32_0 = arith.constant 0 : i32
    %c0_i32_1 = arith.constant 0 : i32
    return %c0_i32, %c0_i32_0 : i32, i32
  }
  func.func @transform_4(%arg0: i32) -> (i32, i32) {
    %c0_i32 = arith.constant 0 : i32
    %c0_i32_0 = arith.constant 0 : i32
    %c0_i32_1 = arith.constant 0 : i32
    return %c0_i32, %c0_i32_0 : i32, i32
  }
  func.func @transform_5(%arg0: i32) -> (i32, i32) {
    %c0_i32 = arith.constant 0 : i32
    %c0_i32_0 = arith.constant 0 : i32
    %c0_i32_1 = arith.constant 0 : i32
    return %c0_i32, %c0_i32_0 : i32, i32
  }
  func.func @transform_6(%arg0: i32) -> (i32, i32) {
    %c0_i32 = arith.constant 0 : i32
    %c0_i32_0 = arith.constant 0 : i32
    %c0_i32_1 = arith.constant 0 : i32
    return %c0_i32, %c0_i32_0 : i32, i32
  }
  func.func @transform_7(%arg0: i32) -> (i32, i32) {
    %c0_i32 = arith.constant 0 : i32
    %c0_i32_0 = arith.constant 0 : i32
    %c0_i32_1 = arith.constant 0 : i32
    return %c0_i32, %c0_i32_0 : i32, i32
  }
  func.func @transform_8(%arg0: i32) -> (i32, i32) {
    %c0_i32 = arith.constant 0 : i32
    %c0_i32_0 = arith.constant 0 : i32
    %c0_i32_1 = arith.constant 0 : i32
    return %c0_i32, %c0_i32_0 : i32, i32
  }
  func.func @transform_9(%arg0: i32) -> (i32, i32) {
    %c0_i32 = arith.constant 0 : i32
    %c0_i32_0 = arith.constant 0 : i32
    %c0_i32_1 = arith.constant 0 : i32
    return %c0_i32, %c0_i32_0 : i32, i32
  }
  func.func @transform_10(%arg0: i32) -> (i32, i32) {
    %c0_i32 = arith.constant 0 : i32
    %c0_i32_0 = arith.constant 0 : i32
    %c0_i32_1 = arith.constant 0 : i32
    return %c0_i32, %c0_i32_0 : i32, i32
  }
  func.func @transform_11(%arg0: i32) -> (i32, i32) {
    %c0_i32 = arith.constant 0 : i32
    %c0_i32_0 = arith.constant 0 : i32
    return %c0_i32, %arg0 : i32, i32
  }
}

</mosaic_0001>

<bundles_post_ra>
// kernel: tpu_custom_call.1
= control target key start
LH: loop header
LB: loop body
LE: loop exit
PB: predicated region body
PF: predicated region fallthrough
CT: control target
= control target key end

     0   :  { %v688_v2 = vmov 0   ;;  %s886_s0 = inlined_call_operand.vmem [shape: f32[1,128], index: 0, kind: input, shape index: {}]   ;;  %s887_s1 = inlined_call_operand.vmem [shape: f32[20,1], index: 1, kind: input, shape index: {}]   ;;  %s888_s2 = inlined_call_operand.vmem [shape: f32[20,1], index: 2, kind: input, shape index: {}]   ;;  %s889_s3 = inlined_call_operand.vmem [shape: f32[20,20], index: 3, kind: input, shape index: {}]   ;;  %s890_s4 = inlined_call_operand.vmem [shape: f32[20,1], index: 4, kind: input, shape index: {}]   ;;  %s891_s5 = inlined_call_operand.vmem [shape: f32[20,20], index: 5, kind: input, shape index: {}]   ;;  %s892_s6 = inlined_call_operand.vmem [shape: f32[20,1], index: 6, kind: input, shape index: {}]   ;;  %s893_s7 = inlined_call_operand.vmem [shape: f32[20,20], index: 7, kind: input, shape index: {}]   ;;  %s894_s8 = inlined_call_operand.vmem [shape: f32[20,1], index: 8, kind: input, shape index: {}]   ;;  %s895_s9 = inlined_call_operand.vmem [shape: f32[4,20], index: 9, kind: input, shape index: {}]   ;;  %s896_s10 = inlined_call_operand.vmem [shape: f32[4,1], index: 10, kind: input, shape index: {}]   ;;  %s897_s11 = inlined_call_operand.hbm [shape: f32[4,128], index: 11, kind: output, shape index: {}]  }
   0x1   :  { %v45_v0 = vld [vmem:[%s888_s2 + $0x10] sm:$0xf]  ;;  %641 = vset.pattern.permute.xlu1 %v688_v2  ;;  %640 = vset.pattern.permute.xlu0 %v688_v2  ;;  %v41_v3 = vld [vmem:[%s887_s1 + $0x8] sm:$0xff]  ;;  %v40_v4 = vld [vmem:[%s887_s1] sm:$0xff] }
   0x2   :  { %v42_v1 = vld [vmem:[%s887_s1 + $0x10] sm:$0xf]  ;;  %82 = vperm.xlu1 %641, %v45_v0  }
   0x3   :  { %58 = vperm.xlu0 %640, %v42_v1  }
   0x4   :  { %16 = vsyncpa [#allocation3], 0  ;;  %v44_v5 = vld [vmem:[%s888_s2 + $0x8] sm:$0xff]  ;;  %v43_v6 = vld [vmem:[%s888_s2] sm:$0xff]  ;;  %v689_v11 = vmov 0.0   ;;  %vm690_vm0 = vmmov 0  }
   0x5   :  { %v96_v7 = vld [vmem:[%s890_s4 + $0x10] sm:$0xf]  ;;  %v95_v8 = vld [vmem:[%s890_s4 + $0x8] sm:$0xff]  ;;  %v94_v9 = vld [vmem:[%s890_s4] sm:$0xff]  ;;  %576 = vmatprep.subr.mxu0 %v689_v11  ;;  %630 = vmatprep.subr.mxu1 %v689_v11  ;;  %vm122_vm1 = vcmask 1043456   ;;  %vm112_vm2 = vcmask 162816  }
   0x6   :  { %48 = vperm.xlu1 %641, %v40_v4   ;;  %v214_v10 = vld [vmem:[%s892_s6 + $0x10] sm:$0xf]  ;;  %v213_v12 = vld [vmem:[%s892_s6 + $0x8] sm:$0xff]  ;;  %v212_v13 = vld [vmem:[%s892_s6] sm:$0xff]  ;;  %582 = vmatprep.mubr.msk.f32.mxu0 %vm690_vm0, %v689_v11  ;;  %s691_s20 = smov [#allocation2]  }
   0x7   :  { %53 = vperm.xlu0 %640, %v41_v3   ;;  %v330_v14 = vld [vmem:[%s894_s8 + $0x10] sm:$0xf]  ;;  %v329_v15 = vld [vmem:[%s894_s8 + $0x8] sm:$0xff]  ;;  %588 = vmatprep.mubr.msk.f32.mxu1 %vm690_vm0, %v689_v11  ;;  %v328_v16 = vld [vmem:[%s894_s8] sm:$0xff]  ;;  %s531_s21 = sshll.u32 %s691_s20, 4  ;;  %s532_s21 = int_to_ptr.vmem [resolvable:$true] %s531_s21 }
   0x8   :  { %v442_v17 = vld [vmem:[%s896_s10] sm:$0xf]  ;;  %v93_v34 = vld [vmem:[%s889_s3 + $0x10] sm:$0xf]  ;;  %v92_v36 = vld [vmem:[%s889_s3 + $0x8] sm:$0xff]  ;;  %s666_s22 = scalar_lea.vmem %s532_s21, 64  ;;  %p671_p1 = scmp.lt.s32.totalorder %s532_s21, %s532_s21 }
   0x9   :  { %v539_v18 = vld [vmem:[%s886_s0] ss:$0 sm:$0xff]  ;;  %v210_v53 = vld [vmem:[%s891_s5 + $0x8] sm:$0xff]  ;;  %v211_v54 = vld [vmem:[%s891_s5 + $0x10] sm:$0xf]  ;;  %p667_p0 = scmp.ne.s32.totalorder %s532_s21, %s666_s22  ;;  %p672_p2 = scmp.lt.s32.totalorder %s666_s22, %s666_s22 }
   0xa   :  { %72 = vperm.xlu1 %641, %v43_v6   ;;  %v91_v33 = vld [vmem:[%s889_s3] sm:$0xff] }
   0xb   :  { %77 = vperm.xlu0 %640, %v44_v5   ;;  %v209_v51 = vld [vmem:[%s891_s5] sm:$0xff]  ;;  %p673_p3 = por %p672_p2, %p671_p1 }
   0xc   :  { %v325_v5 = vld [vmem:[%s893_s7] sm:$0xff] }
   0xd   :  { %p674_p4 = pnand %p673_p3, %p667_p0 }
   0xe   :  { %104 = vperm.xlu1 %641, %v95_v8   ;;  %v327_v8 = vld [vmem:[%s893_s7 + $0x10] sm:$0xf] }
   0xf   :  { %109 = vperm.xlu0 %640, %v96_v7   ;;  %v326_v7 = vld [vmem:[%s893_s7 + $0x8] sm:$0xff] }
  0x12   :  { %227 = vperm.xlu1 %641, %v214_v10  }
  0x13   :  { %99 = vperm.xlu0 %640, %v94_v9  }
  0x16   :  { %217 = vperm.xlu1 %641, %v212_v13  }
  0x17   :  { %222 = vperm.xlu0 %640, %v213_v12  }
  0x1a   :  { %338 = vperm.xlu1 %641, %v329_v15  }
  0x1b   :  { %343 = vperm.xlu0 %640, %v330_v14  }
  0x1e   :  { %445 = vperm.xlu1 %641, %v442_v17  }
  0x1f   :  { %333 = vperm.xlu0 %640, %v328_v16  }
  0x7d   :  { %v83_v19 = vpop.permute.xlu1 %82 }
  0x7e   :  { %v59_v20 = vpop.permute.xlu0 %58 }
  0x7f   :  { %v69_v21 = vmul.f32 %v539_v18, %v59_v20 }
  0x81   :  { %v87_v22 = vadd.f32 %v83_v19, %v69_v21  ;;  %v49_v24 = vpop.permute.xlu1 %48 }
  0x82   :  { %v54_v23 = vpop.permute.xlu0 %53  ;;  %v67_v26 = vmul.f32 %v539_v18, %v49_v24  ;;  %v441_v24 = vld [vmem:[%s895_s9] sm:$0xf] }
  0x83   :  { %642 = vtanh.f32 %v87_v22  ;;  %v68_v25 = vmul.f32 %v539_v18, %v54_v23 }
  0x85   :  { %v73_v28 = vpop.permute.xlu1 %72 }
  0x86   :  { %v78_v27 = vpop.permute.xlu0 %77  ;;  %v85_v30 = vadd.f32 %v73_v28, %v67_v26 }
  0x87   :  { %v86_v29 = vadd.f32 %v78_v27, %v68_v25 }
  0x89   :  { %644 = vtanh.f32 %v86_v29  ;;  %v105_v43 = vpop.permute.xlu1 %104 }
  0x8a   :  { %646 = vtanh.f32 %v85_v30  ;;  %v110_v37 = vpop.permute.xlu0 %109 }
  0x8d   :  { %v228_v57 = vpop.permute.xlu1 %227 }
  0x8e   :  { %v100_v44 = vpop.permute.xlu0 %99 }
  0x90   :  { %v643_v31 = vpop.eup %642 }
  0x91   :  { %577 = vmatpush3.msk.msra.mxu0 %vm122_vm1, %v643_v31  ;;  %633 = vmatpush3.msk.msra.mxu1 %vm122_vm1, %v643_v31  ;;  %v218_v0 = vpop.permute.xlu1 %217 }
  0x92   :  { %578 = vmatprep.subr.mxu0 %v689_v11  ;;  %631 = vmatprep.subr.mxu1 %v689_v11  ;;  %v223_v60 = vpop.permute.xlu0 %222 }
  0x95   :  { %v339_v15 = vpop.permute.xlu1 %338 }
  0x96   :  { %v645_v32 = vpop.eup %644  ;;  %v344_v12 = vpop.permute.xlu0 %343 }
  0x97   :  { %579 = vmatpush3.msra.mxu0 %v645_v32  ;;  %634 = vmatpush3.msra.mxu1 %v645_v32  ;;  %v647_v35 = vpop.eup %646 }
  0x98   :  { %580 = vmatprep.subr.mxu0 %v689_v11  ;;  %632 = vmatprep.subr.mxu1 %v689_v11 }
  0x99   :  { %581 = vmatpush3.msra.mxu0 %v647_v35  ;;  %635 = vmatpush3.msra.mxu1 %v647_v35  ;;  %v446_v26 = vpop.permute.xlu1 %445 }
  0x9a   :  { %583 = vmatmul.mubr.msk.f32.vlgmr.msra.gmra.mxu0 %vm112_vm2, %v91_v33  ;;  %589 = vmatmul.mubr.msk.f32.vlgmr.msra.gmra.mxu1 %vm112_vm2, %v93_v34  ;;  %v334_v19 = vpop.permute.xlu0 %333 }
  0x9b   :  { %585 = vmatprep.mubr.msk.f32.mxu0 %vm690_vm0, %v689_v11  ;;  %591 = vmatprep.subr.mxu1 %v689_v11 }
  0x9c   :  { %597 = vmatprep.mubr.msk.f32.mxu1 %vm690_vm0, %v689_v11  ;;  %606 = vmatprep.subr.mxu0 %v689_v11 }
  0x9e   :  { %586 = vmatmul.mubr.msk.f32.gmra.mxu0 %vm112_vm2, %v92_v36 }
  0x9f   :  { %612 = vmatprep.mubr.msk.f32.mxu0 %vm690_vm0, %v689_v11 }
 0x15a   :  { %v192_v38 = vpop.f32.mrf.mxu0  ;;  %v202_v39 = vpop.f32.mrf.mxu1 }
 0x15b   :  { %v203_v40 = vadd.f32 %v202_v39, %v110_v37  ;;  %v193_v46 = vadd.f32 %v192_v38, %v100_v44 }
 0x15c   :  { %v584_v41 = vpop.f32.mrf.mxu0  ;;  %v590_v42 = vpop.f32.mrf.mxu1 }
 0x15d   :  { %648 = vtanh.f32 %v203_v40 }
 0x15e   :  { %v197_v45 = vpop.f32.mrf.mxu0 }
 0x15f   :  { %v198_v47 = vadd.f32 %v197_v45, %v105_v43 }
 0x160   :  { %v587_v48 = vpop.f32.mrf.mxu0 }
 0x161   :  { %650 = vtanh.f32 %v198_v47 }
 0x162   :  { %652 = vtanh.f32 %v193_v46 }
 0x16a   :  { %v649_v49 = vpop.eup %648 }
 0x16b   :  { %592 = vmatpush3.msk.msra.mxu1 %vm122_vm1, %v649_v49 }
 0x16c   :  { %593 = vmatprep.subr.mxu1 %v689_v11 }
 0x16e   :  { %v651_v50 = vpop.eup %650 }
 0x16f   :  { %594 = vmatpush3.msra.mxu1 %v651_v50  ;;  %v653_v52 = vpop.eup %652 }
 0x170   :  { %595 = vmatprep.subr.mxu1 %v689_v11 }
 0x171   :  { %596 = vmatpush3.msra.mxu1 %v653_v52 }
 0x172   :  { %598 = vmatmul.mubr.msk.f32.vlgmr.msra.gmra.mxu1 %vm112_vm2, %v209_v51  ;;  %621 = vmatprep.subr.mxu1 %v689_v11 }
 0x173   :  { %600 = vmatprep.mubr.msk.f32.mxu1 %vm690_vm0, %v689_v11 }
 0x176   :  { %601 = vmatmul.mubr.msk.f32.gmra.mxu1 %vm112_vm2, %v210_v53 }
 0x177   :  { %603 = vmatprep.mubr.msk.f32.mxu1 %vm690_vm0, %v689_v11 }
 0x17a   :  { %604 = vmatmul.mubr.msk.f32.gmra.mxu1 %vm112_vm2, %v211_v54 }
 0x17b   :  { %627 = vmatprep.mubr.msk.f32.mxu1 %vm690_vm0, %v689_v11 }
 0x232   :  { %v308_v55 = vpop.f32.mrf.mxu1 }
 0x233   :  { %v309_v2 = vadd.f32 %v308_v55, %v218_v0 }
 0x234   :  { %v599_v56 = vpop.f32.mrf.mxu1 }
 0x236   :  { %v313_v58 = vpop.f32.mrf.mxu1 }
 0x237   :  { %v314_v62 = vadd.f32 %v313_v58, %v223_v60 }
 0x238   :  { %v602_v59 = vpop.f32.mrf.mxu1 }
 0x23a   :  { %v318_v61 = vpop.f32.mrf.mxu1 }
 0x23b   :  { %v319_v63 = vadd.f32 %v318_v61, %v228_v57 }
 0x23c   :  { %v605_v1 = vpop.f32.mrf.mxu1 }
 0x23d   :  { %654 = vtanh.f32 %v319_v63 }
 0x23e   :  { %656 = vtanh.f32 %v314_v62 }
 0x23f   :  { %658 = vtanh.f32 %v309_v2 }
 0x24a   :  { %v655_v3 = vpop.eup %654 }
 0x24b   :  { %607 = vmatpush3.msk.msra.mxu0 %vm122_vm1, %v655_v3  ;;  %v657_v4 = vpop.eup %656 }
 0x24c   :  { %608 = vmatprep.subr.mxu0 %v689_v11  ;;  %v659_v6 = vpop.eup %658 }
 0x24d   :  { %609 = vmatpush3.msra.mxu0 %v657_v4 }
 0x24e   :  { %610 = vmatprep.subr.mxu0 %v689_v11 }
 0x24f   :  { %611 = vmatpush3.msra.mxu0 %v659_v6 }
 0x250   :  { %613 = vmatmul.mubr.msk.f32.vlgmr.msra.gmra.mxu0 %vm112_vm2, %v325_v5 }
 0x251   :  { %615 = vmatprep.mubr.msk.f32.mxu0 %vm690_vm0, %v689_v11 }
 0x254   :  { %616 = vmatmul.mubr.msk.f32.gmra.mxu0 %vm112_vm2, %v326_v7 }
 0x255   :  { %618 = vmatprep.mubr.msk.f32.mxu0 %vm690_vm0, %v689_v11 }
 0x258   :  { %619 = vmatmul.mubr.msk.f32.gmra.mxu0 %vm112_vm2, %v327_v8 }
 0x310   :  { %v424_v9 = vpop.f32.mrf.mxu0 }
 0x311   :  { %v425_v21 = vadd.f32 %v424_v9, %v334_v19 }
 0x312   :  { %v614_v10 = vpop.f32.mrf.mxu0 }
 0x314   :  { %v429_v13 = vpop.f32.mrf.mxu0 }
 0x315   :  { %v430_v17 = vadd.f32 %v429_v13, %v339_v15 }
 0x316   :  { %v617_v14 = vpop.f32.mrf.mxu0 }
 0x318   :  { %v434_v16 = vpop.f32.mrf.mxu0 }
 0x319   :  { %v435_v18 = vadd.f32 %v434_v16, %v344_v12 }
 0x31a   :  { %v620_v20 = vpop.f32.mrf.mxu0 }
 0x31b   :  { %660 = vtanh.f32 %v435_v18 }
 0x31c   :  { %662 = vtanh.f32 %v430_v17 }
 0x31d   :  { %664 = vtanh.f32 %v425_v21 }
 0x328   :  { %v661_v22 = vpop.eup %660 }
 0x329   :  { %622 = vmatpush3.msk.msra.mxu1 %vm122_vm1, %v661_v22  ;;  %v663_v23 = vpop.eup %662 }
 0x32a   :  { %623 = vmatprep.subr.mxu1 %v689_v11  ;;  %v665_v25 = vpop.eup %664 }
 0x32b   :  { %624 = vmatpush3.msra.mxu1 %v663_v23 }
 0x32c   :  { %625 = vmatprep.subr.mxu1 %v689_v11 }
 0x32d   :  { %626 = vmatpush3.msra.mxu1 %v665_v25 }
 0x32e   :  { %628 = vmatmul.mubr.msk.f32.vlgmr.msra.gmra.mxu1 %vm112_vm2, %v441_v24 }
 0x3ee   :  { %v520_v27 = vpop.f32.mrf.mxu1 }
 0x3ef   :  { %v521_v28 = vadd.f32 %v520_v27, %v446_v26 }
 0x3f0   :  { %v629_v29 = vpop.f32.mrf.mxu1 }
 0x3f1   :  { %524 = vst [vmem:[#allocation2] sm:$0xf] %v521_v28 }
 0x3f2   :  { %677 = shalt.err (!%p674_p4)
}
 0x3f3   :  { %534 = dma.vmem_to_hbm [thread:$0]  %s532_s21, 64, %s897_s11, [#allocation3]  }
 0x3f4   :  { %686 = dma.done.wait [#allocation3], 64  }
 0x3f5   :  { %687 = vsyncadd [#allocation3], 4294967232 }
 0x3f6   :  { %538 = vsyncpa [#allocation3], 1 }

</bundles_post_ra>
